<compile_context>
chip_gen: v7x
topology: tpu7x:2x2x1
jax: 0.10.0
libtpu: 0.0.40
codegen_flags: <defaults>
</compile_context>

<pallas_src>
import math

import jax
import jax.numpy as jnp
from jax import lax
from jax.experimental import pallas as pl
from jax.experimental.pallas import tpu as pltpu


_BLOCK_BYTES = 2 * 1024 * 1024      # per-operand block target (~2 MiB)
_GROUP_BYTES = 64 * 1024            # per-iteration live-range target (16 vregs)
_USE_REV = True                     # flipped to False if lax.rev fails to lower


def _largest_div_mult(n, base, cap):
    """Largest divisor of n that is a multiple of `base` and <= cap, else None."""
    k = min(cap, n) // base
    while k >= 1:
        c = k * base
        if n % c == 0:
            return c
        k -= 1
    return None


def _largest_divisor_leq(n, cap):
    cap = max(1, min(n, cap))
    for c in range(cap, 0, -1):
        if n % c == 0:
            return c
    return 1


def _sublane_pack(dtype):
    return {1: 32, 2: 16, 4: 8}.get(jnp.dtype(dtype).itemsize, 8)


# ----------------------------------------------------------------------------
# Fast path 1: flip a non-minormost dim (L maps to the sublane axis).
# ----------------------------------------------------------------------------
def _make_sublane_kernel(bP, bL, GL):
    n_grp = bL // GL
    rem = bL % GL

    def kernel(x_ref, o_ref):
        # Block is (bP, bL, bS).  Output group g <- reversed input group nG-1-g.
        def row_body(p, carry):
            def grp_body(g, c):
                o0 = pl.multiple_of(g * GL, GL)
                i0 = bL - GL - o0
                if rem == 0:
                    i0 = pl.multiple_of(i0, GL)
                o_ref[p, pl.ds(o0, GL), :] = jnp.flip(
                    x_ref[p, pl.ds(i0, GL), :], axis=0)
                return c

            lax.fori_loop(0, n_grp, grp_body, 0, unroll=n_grp <= 8)
            if rem:
                o0 = n_grp * GL
                o_ref[p, o0:o0 + rem, :] = jnp.flip(x_ref[p, 0:rem, :], axis=0)
            return carry

        lax.fori_loop(0, bP, row_body, 0, unroll=bP <= 4)

    return kernel


def _flip_sublane(x, dim):
    shape = x.shape
    L = shape[dim]
    P = math.prod(shape[:dim])
    S = math.prod(shape[dim + 1:])
    itemsize = jnp.dtype(x.dtype).itemsize
    pack = _sublane_pack(x.dtype)

    x3 = x.reshape(P, L, S)

    # Lane tile: multiple of 128 when possible, else the full trailing extent.
    # TODO(synk): 1 < S < 128 (e.g. the demo's S=16) leaves lane-masked stores;
    # a layout that folds more of the trailing dims into lanes would be denser.
    bS = _largest_div_mult(S, 128, 512) or S
    # Flipped-dim tile: multiple of the dtype's sublane packing, dividing L.
    bL = _largest_div_mult(L, pack, 256) or L
    # TODO(synk): if L has no pack-multiple divisor AND L*bS*itemsize is huge
    # (e.g. a very large prime L), the single-L block may exceed VMEM; such
    # shapes would need masked edge blocks.

    # Group size for the in-kernel reversal: one native sublane tile, capped so
    # a (GL, bS) slab stays <= ~16 vregs (bounds live range, no spills).
    GL = min(bL, pack)
    GL = max(1, min(GL, _GROUP_BYTES // max(1, bS * itemsize)))

    # Fold P rows so each grid step moves ~_BLOCK_BYTES per operand (recomputed
    # after any bL/bS fallback so the budget is always respected).
    max_bp = max(1, _BLOCK_BYTES // (bL * bS * itemsize))
    bP = _largest_divisor_leq(P, min(P, max_bp))
    # Megacore: keep >= 2 grid steps when possible so both TCs get work.
    if (P // bP) * (L // bL) * (S // bS) < 2 and P > 1:
        for d in (2, 3, 5, 7):
            if P % d == 0:
                bP = P // d
                break

    nL = L // bL
    grid = (P // bP, nL, S // bS)

    out3 = pl.pallas_call(
        _make_sublane_kernel(bP, bL, GL),
        out_shape=jax.ShapeDtypeStruct((P, L, S), x.dtype),
        grid=grid,
        in_specs=[pl.BlockSpec((bP, bL, bS), lambda p, l, s: (p, l, s))],
        out_specs=pl.BlockSpec((bP, bL, bS), lambda p, l, s: (p, nL - 1 - l, s)),
        compiler_params=pltpu.CompilerParams(
            dimension_semantics=("parallel", "parallel", "parallel")),
        cost_estimate=pl.CostEstimate(
            flops=0, transcendentals=0, bytes_accessed=2 * x.size * itemsize),
    )(x3)
    return out3.reshape(shape)


# ----------------------------------------------------------------------------
# Fast path 2: flip the minormost dim (L maps to the lane axis).
# ----------------------------------------------------------------------------
def _make_lane_kernel(bP, bL, GP):
    n_grp = bP // GP
    rem = bP % GP

    def kernel(x_ref, o_ref):
        # Block is (bP, bL): rows are NOT reversed, lanes are.
        def grp_body(g, c):
            r0 = pl.multiple_of(g * GP, GP)
            o_ref[pl.ds(r0, GP), :] = jnp.flip(x_ref[pl.ds(r0, GP), :], axis=-1)
            return c

        lax.fori_loop(0, n_grp, grp_body, 0, unroll=n_grp <= 8)
        if rem:
            r0 = n_grp * GP
            o_ref[r0:r0 + rem, :] = jnp.flip(x_ref[r0:r0 + rem, :], axis=-1)

    return kernel


def _flip_lane(x, dim):
    shape = x.shape
    L = shape[-1]
    P = math.prod(shape[:-1])
    itemsize = jnp.dtype(x.dtype).itemsize
    pack = _sublane_pack(x.dtype)

    x2 = x.reshape(P, L)

    # Lane tile along the flipped dim: multiple of 128 dividing L, else full L.
    # TODO(synk): L not a multiple of 128 leaves lane-masked stores on the edge.
    bL = _largest_div_mult(L, 128, 512) or L

    rows_budget = max(1, _BLOCK_BYTES // max(1, bL * itemsize))
    cap = max(1, min(P, rows_budget))
    bP = (_largest_div_mult(P, pack, cap)
          or _largest_div_mult(P, 8, cap)
          or P)
    # Megacore: keep >= 2 grid steps when possible (stay sublane-aligned).
    if (P // bP) * (L // bL) < 2 and P > 1:
        for d in (2, 3, 5, 7):
            if P % d == 0 and (P // d) % pack == 0:
                bP = P // d
                break

    # Row-group size per in-kernel flip: bounded live range, sublane-aligned.
    GP = max(1, min(bP, _GROUP_BYTES // max(1, bL * itemsize)))
    if GP >= pack:
        GP = (GP // pack) * pack

    nL = L // bL
    grid = (P // bP, nL)

    out2 = pl.pallas_call(
        _make_lane_kernel(bP, bL, GP),
        out_shape=jax.ShapeDtypeStruct((P, L), x.dtype),
        grid=grid,
        in_specs=[pl.BlockSpec((bP, bL), lambda p, l: (p, l))],
        out_specs=pl.BlockSpec((bP, bL), lambda p, l: (p, nL - 1 - l)),
        compiler_params=pltpu.CompilerParams(
            dimension_semantics=("parallel", "parallel")),
        cost_estimate=pl.CostEstimate(
            flops=0, transcendentals=0, bytes_accessed=2 * x.size * itemsize),
    )(x2)
    return out2.reshape(shape)


# ----------------------------------------------------------------------------
# Fallback: per-row slice-copy kernel (guaranteed to lower; previous version).
# Only used if lax.rev does not lower on this backend/version.
# ----------------------------------------------------------------------------
def _flip_rowcopy(x, dim):
    shape = x.shape
    L = shape[dim]
    P = math.prod(shape[:dim])
    S = math.prod(shape[dim + 1:])
    itemsize = jnp.dtype(x.dtype).itemsize

    x3 = x.reshape(P, L, S)
    bS = _largest_div_mult(S, 128, 512) or S
    bL = next((c for c in (32, 24, 16, 8) if c <= L and L % c == 0), L)
    max_bp = max(1, (1 << 20) // (bL * bS * itemsize))
    bP = _largest_divisor_leq(P, min(P, max_bp))
    nL = L // bL

    def kernel(x_ref, o_ref):
        for i in range(bL):
            o_ref[:, i, :] = x_ref[:, bL - 1 - i, :]

    out3 = pl.pallas_call(
        kernel,
        out_shape=jax.ShapeDtypeStruct((P, L, S), x.dtype),
        grid=(P // bP, nL, S // bS),
        in_specs=[pl.BlockSpec((bP, bL, bS), lambda p, l, s: (p, l, s))],
        out_specs=pl.BlockSpec((bP, bL, bS), lambda p, l, s: (p, nL - 1 - l, s)),
        compiler_params=pltpu.CompilerParams(
            dimension_semantics=("parallel", "parallel", "parallel")),
        cost_estimate=pl.CostEstimate(
            flops=0, transcendentals=0, bytes_accessed=2 * x.size * itemsize),
    )(x3)
    return out3.reshape(shape)


# ----------------------------------------------------------------------------
# Public entry point == FlipLayer(dim).forward(x)
# ----------------------------------------------------------------------------
def flip_layer(x, dim):
    """Pallas equivalent of torch.flip(x, [dim])."""
    global _USE_REV
    dim = dim % x.ndim
    if x.shape[dim] <= 1:
        return x  # flipping a size-1 axis is the identity
    if _USE_REV:
        try:
            if dim == x.ndim - 1:
                return _flip_lane(x, dim)
            return _flip_sublane(x, dim)
        except Exception:
            # lax.rev did not lower on this backend; use the dense fallback.
            _USE_REV = False
    return _flip_rowcopy(x, dim)


if __name__ == "__main__":
    key = jax.random.PRNGKey(0)
    # Demo input in NCHW; the module instance under test is FlipLayer(dim=2).
    x = jax.random.normal(key, (2, 4, 16, 16), dtype=jnp.float32)
    dim = 2

    out = jax.block_until_ready(flip_layer(x, dim))
    assert out.shape == x.shape and out.dtype == x.dtype
    assert bool(jnp.array_equal(out, jnp.flip(x, axis=dim))), "mismatch dim=2"

    # Exercise the remaining paths (leading dims -> sublane path with small L,
    # last dim -> lane path) for extra confidence.
    for d in (0, 1, 3):
        o = jax.block_until_ready(flip_layer(x, d))
        assert bool(jnp.array_equal(o, jnp.flip(x, axis=d))), f"mismatch dim={d}"

    print("KERNEL_OK")
</pallas_src>

<mosaic_0001>
module attributes {stable_mosaic.version = 11 : i64} {
  func.func @kernel(%arg0: i32, %arg1: i32, %arg2: i32, %arg3: memref<8x16x16xf32, #tpu.memory_space<vmem>>, %arg4: memref<8x16x16xf32, #tpu.memory_space<vmem>>) attributes {dimension_semantics = [#tpu.dimension_semantics<parallel>, #tpu.dimension_semantics<parallel>, #tpu.dimension_semantics<parallel>], iteration_bounds = array<i64: 1, 1, 1>, scalar_prefetch = 0 : i64, scratch_operands = 0 : i64, tpu.core_type = #tpu.core_type<tc>, window_params = [{transform_indices = @transform_0, window_bounds = array<i64: 8, 16, 16>}, {transform_indices = @transform_1, window_bounds = array<i64: 8, 16, 16>}]} {
    %c0 = arith.constant 0 : index
    %c15 = arith.constant 15 : index
    %c0_0 = arith.constant 0 : index
    %0 = vector.load %arg3[%c0, %c15, %c0_0] : memref<8x16x16xf32, #tpu.memory_space<vmem>>, vector<8x1x16xf32>
    %1 = vector.shape_cast %0 : vector<8x1x16xf32> to vector<8x16xf32>
    %c0_1 = arith.constant 0 : index
    %c0_2 = arith.constant 0 : index
    %c0_3 = arith.constant 0 : index
    %2 = vector.load %arg4[%c0_1, %c0_2, %c0_3] : memref<8x16x16xf32, #tpu.memory_space<vmem>>, vector<8x1x16xf32>
    %3 = vector.shape_cast %2 : vector<8x1x16xf32> to vector<8x16xf32>
    %4 = vector.shape_cast %1 : vector<8x16xf32> to vector<8x1x16xf32>
    tpu.vector_store %arg4[%c0_1, %c0_2, %c0_3], %4 {strides = array<i32>} : memref<8x16x16xf32, #tpu.memory_space<vmem>>, vector<8x1x16xf32>,
    %c0_4 = arith.constant 0 : index
    %c14 = arith.constant 14 : index
    %c0_5 = arith.constant 0 : index
    %5 = vector.load %arg3[%c0_4, %c14, %c0_5] : memref<8x16x16xf32, #tpu.memory_space<vmem>>, vector<8x1x16xf32>
    %6 = vector.shape_cast %5 : vector<8x1x16xf32> to vector<8x16xf32>
    %c0_6 = arith.constant 0 : index
    %c1 = arith.constant 1 : index
    %c0_7 = arith.constant 0 : index
    %7 = vector.load %arg4[%c0_6, %c1, %c0_7] : memref<8x16x16xf32, #tpu.memory_space<vmem>>, vector<8x1x16xf32>
    %8 = vector.shape_cast %7 : vector<8x1x16xf32> to vector<8x16xf32>
    %9 = vector.shape_cast %6 : vector<8x16xf32> to vector<8x1x16xf32>
    tpu.vector_store %arg4[%c0_6, %c1, %c0_7], %9 {strides = array<i32>} : memref<8x16x16xf32, #tpu.memory_space<vmem>>, vector<8x1x16xf32>,
    %c0_8 = arith.constant 0 : index
    %c13 = arith.constant 13 : index
    %c0_9 = arith.constant 0 : index
    %10 = vector.load %arg3[%c0_8, %c13, %c0_9] : memref<8x16x16xf32, #tpu.memory_space<vmem>>, vector<8x1x16xf32>
    %11 = vector.shape_cast %10 : vector<8x1x16xf32> to vector<8x16xf32>
    %c0_10 = arith.constant 0 : index
    %c2 = arith.constant 2 : index
    %c0_11 = arith.constant 0 : index
    %12 = vector.load %arg4[%c0_10, %c2, %c0_11] : memref<8x16x16xf32, #tpu.memory_space<vmem>>, vector<8x1x16xf32>
    %13 = vector.shape_cast %12 : vector<8x1x16xf32> to vector<8x16xf32>
    %14 = vector.shape_cast %11 : vector<8x16xf32> to vector<8x1x16xf32>
    tpu.vector_store %arg4[%c0_10, %c2, %c0_11], %14 {strides = array<i32>} : memref<8x16x16xf32, #tpu.memory_space<vmem>>, vector<8x1x16xf32>,
    %c0_12 = arith.constant 0 : index
    %c12 = arith.constant 12 : index
    %c0_13 = arith.constant 0 : index
    %15 = vector.load %arg3[%c0_12, %c12, %c0_13] : memref<8x16x16xf32, #tpu.memory_space<vmem>>, vector<8x1x16xf32>
    %16 = vector.shape_cast %15 : vector<8x1x16xf32> to vector<8x16xf32>
    %c0_14 = arith.constant 0 : index
    %c3 = arith.constant 3 : index
    %c0_15 = arith.constant 0 : index
    %17 = vector.load %arg4[%c0_14, %c3, %c0_15] : memref<8x16x16xf32, #tpu.memory_space<vmem>>, vector<8x1x16xf32>
    %18 = vector.shape_cast %17 : vector<8x1x16xf32> to vector<8x16xf32>
    %19 = vector.shape_cast %16 : vector<8x16xf32> to vector<8x1x16xf32>
    tpu.vector_store %arg4[%c0_14, %c3, %c0_15], %19 {strides = array<i32>} : memref<8x16x16xf32, #tpu.memory_space<vmem>>, vector<8x1x16xf32>,
    %c0_16 = arith.constant 0 : index
    %c11 = arith.constant 11 : index
    %c0_17 = arith.constant 0 : index
    %20 = vector.load %arg3[%c0_16, %c11, %c0_17] : memref<8x16x16xf32, #tpu.memory_space<vmem>>, vector<8x1x16xf32>
    %21 = vector.shape_cast %20 : vector<8x1x16xf32> to vector<8x16xf32>
    %c0_18 = arith.constant 0 : index
    %c4 = arith.constant 4 : index
    %c0_19 = arith.constant 0 : index
    %22 = vector.load %arg4[%c0_18, %c4, %c0_19] : memref<8x16x16xf32, #tpu.memory_space<vmem>>, vector<8x1x16xf32>
    %23 = vector.shape_cast %22 : vector<8x1x16xf32> to vector<8x16xf32>
    %24 = vector.shape_cast %21 : vector<8x16xf32> to vector<8x1x16xf32>
    tpu.vector_store %arg4[%c0_18, %c4, %c0_19], %24 {strides = array<i32>} : memref<8x16x16xf32, #tpu.memory_space<vmem>>, vector<8x1x16xf32>,
    %c0_20 = arith.constant 0 : index
    %c10 = arith.constant 10 : index
    %c0_21 = arith.constant 0 : index
    %25 = vector.load %arg3[%c0_20, %c10, %c0_21] : memref<8x16x16xf32, #tpu.memory_space<vmem>>, vector<8x1x16xf32>
    %26 = vector.shape_cast %25 : vector<8x1x16xf32> to vector<8x16xf32>
    %c0_22 = arith.constant 0 : index
    %c5 = arith.constant 5 : index
    %c0_23 = arith.constant 0 : index
    %27 = vector.load %arg4[%c0_22, %c5, %c0_23] : memref<8x16x16xf32, #tpu.memory_space<vmem>>, vector<8x1x16xf32>
    %28 = vector.shape_cast %27 : vector<8x1x16xf32> to vector<8x16xf32>
    %29 = vector.shape_cast %26 : vector<8x16xf32> to vector<8x1x16xf32>
    tpu.vector_store %arg4[%c0_22, %c5, %c0_23], %29 {strides = array<i32>} : memref<8x16x16xf32, #tpu.memory_space<vmem>>, vector<8x1x16xf32>,
    %c0_24 = arith.constant 0 : index
    %c9 = arith.constant 9 : index
    %c0_25 = arith.constant 0 : index
    %30 = vector.load %arg3[%c0_24, %c9, %c0_25] : memref<8x16x16xf32, #tpu.memory_space<vmem>>, vector<8x1x16xf32>
    %31 = vector.shape_cast %30 : vector<8x1x16xf32> to vector<8x16xf32>
    %c0_26 = arith.constant 0 : index
    %c6 = arith.constant 6 : index
    %c0_27 = arith.constant 0 : index
    %32 = vector.load %arg4[%c0_26, %c6, %c0_27] : memref<8x16x16xf32, #tpu.memory_space<vmem>>, vector<8x1x16xf32>
    %33 = vector.shape_cast %32 : vector<8x1x16xf32> to vector<8x16xf32>
    %34 = vector.shape_cast %31 : vector<8x16xf32> to vector<8x1x16xf32>
    tpu.vector_store %arg4[%c0_26, %c6, %c0_27], %34 {strides = array<i32>} : memref<8x16x16xf32, #tpu.memory_space<vmem>>, vector<8x1x16xf32>,
    %c0_28 = arith.constant 0 : index
    %c8 = arith.constant 8 : index
    %c0_29 = arith.constant 0 : index
    %35 = vector.load %arg3[%c0_28, %c8, %c0_29] : memref<8x16x16xf32, #tpu.memory_space<vmem>>, vector<8x1x16xf32>
    %36 = vector.shape_cast %35 : vector<8x1x16xf32> to vector<8x16xf32>
    %c0_30 = arith.constant 0 : index
    %c7 = arith.constant 7 : index
    %c0_31 = arith.constant 0 : index
    %37 = vector.load %arg4[%c0_30, %c7, %c0_31] : memref<8x16x16xf32, #tpu.memory_space<vmem>>, vector<8x1x16xf32>
    %38 = vector.shape_cast %37 : vector<8x1x16xf32> to vector<8x16xf32>
    %39 = vector.shape_cast %36 : vector<8x16xf32> to vector<8x1x16xf32>
    tpu.vector_store %arg4[%c0_30, %c7, %c0_31], %39 {strides = array<i32>} : memref<8x16x16xf32, #tpu.memory_space<vmem>>, vector<8x1x16xf32>,
    %c0_32 = arith.constant 0 : index
    %c7_33 = arith.constant 7 : index
    %c0_34 = arith.constant 0 : index
    %40 = vector.load %arg3[%c0_32, %c7_33, %c0_34] : memref<8x16x16xf32, #tpu.memory_space<vmem>>, vector<8x1x16xf32>
    %41 = vector.shape_cast %40 : vector<8x1x16xf32> to vector<8x16xf32>
    %c0_35 = arith.constant 0 : index
    %c8_36 = arith.constant 8 : index
    %c0_37 = arith.constant 0 : index
    %42 = vector.load %arg4[%c0_35, %c8_36, %c0_37] : memref<8x16x16xf32, #tpu.memory_space<vmem>>, vector<8x1x16xf32>
    %43 = vector.shape_cast %42 : vector<8x1x16xf32> to vector<8x16xf32>
    %44 = vector.shape_cast %41 : vector<8x16xf32> to vector<8x1x16xf32>
    tpu.vector_store %arg4[%c0_35, %c8_36, %c0_37], %44 {strides = array<i32>} : memref<8x16x16xf32, #tpu.memory_space<vmem>>, vector<8x1x16xf32>,
    %c0_38 = arith.constant 0 : index
    %c6_39 = arith.constant 6 : index
    %c0_40 = arith.constant 0 : index
    %45 = vector.load %arg3[%c0_38, %c6_39, %c0_40] : memref<8x16x16xf32, #tpu.memory_space<vmem>>, vector<8x1x16xf32>
    %46 = vector.shape_cast %45 : vector<8x1x16xf32> to vector<8x16xf32>
    %c0_41 = arith.constant 0 : index
    %c9_42 = arith.constant 9 : index
    %c0_43 = arith.constant 0 : index
    %47 = vector.load %arg4[%c0_41, %c9_42, %c0_43] : memref<8x16x16xf32, #tpu.memory_space<vmem>>, vector<8x1x16xf32>
    %48 = vector.shape_cast %47 : vector<8x1x16xf32> to vector<8x16xf32>
    %49 = vector.shape_cast %46 : vector<8x16xf32> to vector<8x1x16xf32>
    tpu.vector_store %arg4[%c0_41, %c9_42, %c0_43], %49 {strides = array<i32>} : memref<8x16x16xf32, #tpu.memory_space<vmem>>, vector<8x1x16xf32>,
    %c0_44 = arith.constant 0 : index
    %c5_45 = arith.constant 5 : index
    %c0_46 = arith.constant 0 : index
    %50 = vector.load %arg3[%c0_44, %c5_45, %c0_46] : memref<8x16x16xf32, #tpu.memory_space<vmem>>, vector<8x1x16xf32>
    %51 = vector.shape_cast %50 : vector<8x1x16xf32> to vector<8x16xf32>
    %c0_47 = arith.constant 0 : index
    %c10_48 = arith.constant 10 : index
    %c0_49 = arith.constant 0 : index
    %52 = vector.load %arg4[%c0_47, %c10_48, %c0_49] : memref<8x16x16xf32, #tpu.memory_space<vmem>>, vector<8x1x16xf32>
    %53 = vector.shape_cast %52 : vector<8x1x16xf32> to vector<8x16xf32>
    %54 = vector.shape_cast %51 : vector<8x16xf32> to vector<8x1x16xf32>
    tpu.vector_store %arg4[%c0_47, %c10_48, %c0_49], %54 {strides = array<i32>} : memref<8x16x16xf32, #tpu.memory_space<vmem>>, vector<8x1x16xf32>,
    %c0_50 = arith.constant 0 : index
    %c4_51 = arith.constant 4 : index
    %c0_52 = arith.constant 0 : index
    %55 = vector.load %arg3[%c0_50, %c4_51, %c0_52] : memref<8x16x16xf32, #tpu.memory_space<vmem>>, vector<8x1x16xf32>
    %56 = vector.shape_cast %55 : vector<8x1x16xf32> to vector<8x16xf32>
    %c0_53 = arith.constant 0 : index
    %c11_54 = arith.constant 11 : index
    %c0_55 = arith.constant 0 : index
    %57 = vector.load %arg4[%c0_53, %c11_54, %c0_55] : memref<8x16x16xf32, #tpu.memory_space<vmem>>, vector<8x1x16xf32>
    %58 = vector.shape_cast %57 : vector<8x1x16xf32> to vector<8x16xf32>
    %59 = vector.shape_cast %56 : vector<8x16xf32> to vector<8x1x16xf32>
    tpu.vector_store %arg4[%c0_53, %c11_54, %c0_55], %59 {strides = array<i32>} : memref<8x16x16xf32, #tpu.memory_space<vmem>>, vector<8x1x16xf32>,
    %c0_56 = arith.constant 0 : index
    %c3_57 = arith.constant 3 : index
    %c0_58 = arith.constant 0 : index
    %60 = vector.load %arg3[%c0_56, %c3_57, %c0_58] : memref<8x16x16xf32, #tpu.memory_space<vmem>>, vector<8x1x16xf32>
    %61 = vector.shape_cast %60 : vector<8x1x16xf32> to vector<8x16xf32>
    %c0_59 = arith.constant 0 : index
    %c12_60 = arith.constant 12 : index
    %c0_61 = arith.constant 0 : index
    %62 = vector.load %arg4[%c0_59, %c12_60, %c0_61] : memref<8x16x16xf32, #tpu.memory_space<vmem>>, vector<8x1x16xf32>
    %63 = vector.shape_cast %62 : vector<8x1x16xf32> to vector<8x16xf32>
    %64 = vector.shape_cast %61 : vector<8x16xf32> to vector<8x1x16xf32>
    tpu.vector_store %arg4[%c0_59, %c12_60, %c0_61], %64 {strides = array<i32>} : memref<8x16x16xf32, #tpu.memory_space<vmem>>, vector<8x1x16xf32>,
    %c0_62 = arith.constant 0 : index
    %c2_63 = arith.constant 2 : index
    %c0_64 = arith.constant 0 : index
    %65 = vector.load %arg3[%c0_62, %c2_63, %c0_64] : memref<8x16x16xf32, #tpu.memory_space<vmem>>, vector<8x1x16xf32>
    %66 = vector.shape_cast %65 : vector<8x1x16xf32> to vector<8x16xf32>
    %c0_65 = arith.constant 0 : index
    %c13_66 = arith.constant 13 : index
    %c0_67 = arith.constant 0 : index
    %67 = vector.load %arg4[%c0_65, %c13_66, %c0_67] : memref<8x16x16xf32, #tpu.memory_space<vmem>>, vector<8x1x16xf32>
    %68 = vector.shape_cast %67 : vector<8x1x16xf32> to vector<8x16xf32>
    %69 = vector.shape_cast %66 : vector<8x16xf32> to vector<8x1x16xf32>
    tpu.vector_store %arg4[%c0_65, %c13_66, %c0_67], %69 {strides = array<i32>} : memref<8x16x16xf32, #tpu.memory_space<vmem>>, vector<8x1x16xf32>,
    %c0_68 = arith.constant 0 : index
    %c1_69 = arith.constant 1 : index
    %c0_70 = arith.constant 0 : index
    %70 = vector.load %arg3[%c0_68, %c1_69, %c0_70] : memref<8x16x16xf32, #tpu.memory_space<vmem>>, vector<8x1x16xf32>
    %71 = vector.shape_cast %70 : vector<8x1x16xf32> to vector<8x16xf32>
    %c0_71 = arith.constant 0 : index
    %c14_72 = arith.constant 14 : index
    %c0_73 = arith.constant 0 : index
    %72 = vector.load %arg4[%c0_71, %c14_72, %c0_73] : memref<8x16x16xf32, #tpu.memory_space<vmem>>, vector<8x1x16xf32>
    %73 = vector.shape_cast %72 : vector<8x1x16xf32> to vector<8x16xf32>
    %74 = vector.shape_cast %71 : vector<8x16xf32> to vector<8x1x16xf32>
    tpu.vector_store %arg4[%c0_71, %c14_72, %c0_73], %74 {strides = array<i32>} : memref<8x16x16xf32, #tpu.memory_space<vmem>>, vector<8x1x16xf32>,
    %c0_74 = arith.constant 0 : index
    %c0_75 = arith.constant 0 : index
    %c0_76 = arith.constant 0 : index
    %75 = vector.load %arg3[%c0_74, %c0_75, %c0_76] : memref<8x16x16xf32, #tpu.memory_space<vmem>>, vector<8x1x16xf32>
    %76 = vector.shape_cast %75 : vector<8x1x16xf32> to vector<8x16xf32>
    %c0_77 = arith.constant 0 : index
    %c15_78 = arith.constant 15 : index
    %c0_79 = arith.constant 0 : index
    %77 = vector.load %arg4[%c0_77, %c15_78, %c0_79] : memref<8x16x16xf32, #tpu.memory_space<vmem>>, vector<8x1x16xf32>
    %78 = vector.shape_cast %77 : vector<8x1x16xf32> to vector<8x16xf32>
    %79 = vector.shape_cast %76 : vector<8x16xf32> to vector<8x1x16xf32>
    tpu.vector_store %arg4[%c0_77, %c15_78, %c0_79], %79 {strides = array<i32>} : memref<8x16x16xf32, #tpu.memory_space<vmem>>, vector<8x1x16xf32>,
    return
  }
  func.func @transform_0(%arg0: i32, %arg1: i32, %arg2: i32) -> (i32, i32, i32) {
    %c0_i32 = arith.constant 0 : i32
    return %arg0, %arg1, %arg2 : i32, i32, i32
  }
  func.func @transform_1(%arg0: i32, %arg1: i32, %arg2: i32) -> (i32, i32, i32) {
    %c0_i32 = arith.constant 0 : i32
    %0 = arith.subi %c0_i32, %arg1 : i32
    %c0_i32_0 = arith.constant 0 : i32
    return %arg0, %0, %arg2 : i32, i32, i32
  }
}

</mosaic_0001>

<bundles_post_ra>
// kernel: tpu_custom_call.1
= control target key start
LH: loop header
LB: loop body
LE: loop exit
PB: predicated region body
PF: predicated region fallthrough
CT: control target
= control target key end

     0   :  { %6 = vsyncpa [#allocation3], 0  ;;  %s532_s0 = inlined_call_operand.hbm [shape: f32[8,16,16], index: 0, kind: input, shape index: {}]   ;;  %s533_s1 = inlined_call_operand.hbm [shape: f32[8,16,16], index: 1, kind: output, shape index: {}]  }
   0x1   :  { %7 = vsyncpa [#allocation4], 0  ;;  %s357_s6 = smov [#allocation2]   ;;  %s309_s10 = scalar_lea.hbm %s532_s0, 2048 }
   0x2   :  { %s13_s7 = sshll.u32 %s357_s6, 4  ;;  %p310_p0 = scmp.ne.s32.totalorder %s532_s0, %s309_s10  ;;  %s14_s7 = int_to_ptr.vmem [resolvable:$true] %s13_s7 }
   0x3   :  { %p313_p1 = scmp.lt.u32.totalorder %s309_s10, %s532_s0 }
   0x5   :  { %p315_p2 = pnand %p313_p1, %p310_p0 }
   0x7   :  { %318 = shalt.err (!%p315_p2)
}
   0x8   :  { %s319_s15 = scalar_lea.vmem %s14_s7, 2048  ;;  %p324_p4 = scmp.lt.s32.totalorder %s14_s7, %s14_s7 }
   0x9   :  { %p320_p3 = scmp.ne.s32.totalorder %s14_s7, %s319_s15  ;;  %p325_p5 = scmp.lt.s32.totalorder %s319_s15, %s319_s15 }
   0xb   :  { %p326_p6 = por %p325_p5, %p324_p4 }
   0xd   :  { %p327_p7 = pnand %p326_p6, %p320_p3 }
   0xf   :  { %330 = shalt.err (!%p327_p7)
}
  0x10   :  { %s358_s16 = smov 128   ;;  %s359_s17 = smov 8  }
  0x11   :  { %19 = dma.hbm_to_vmem [thread:$0]  %s532_s0, 2048, %s14_s7, [#allocation3], %s358_s16, %s358_s16, %s359_s17  }
  0x12   :  { %353 = dma.done.wait [#allocation3], 2048  }
  0x13   :  { %354 = vsyncadd [#allocation3], 4294965248  ;;  %vm33_vm0 = vcmask 122880   ;;  %s360_s20 = smov [#allocation5]   ;;  %v25_v0 = vld [vmem:[#allocation2 + $0xf] sm:$0x1] }
  0x14   :  { %s386_s21 = sshll.u32 %s360_s20, 4  ;;  %v26_v1 = vld [vmem:[#allocation2 + $0x1f] sm:$0x1]  ;;  %v27_v2 = vld [vmem:[#allocation2 + $0x2f] sm:$0x1]  ;;  %s292_s21 = int_to_ptr.vmem [resolvable:$true] %s386_s21 }
  0x15   :  { %34 = vst.msk [vmem:[#allocation5] sm:$0x1] %vm33_vm0, %v25_v0  ;;  %35 = vst.msk [vmem:[#allocation5 + $0x10] sm:$0x1] %vm33_vm0, %v26_v1  ;;  %v28_v3 = vld [vmem:[#allocation2 + $0x3f] sm:$0x1]  ;;  %p336_p9 = scmp.lt.s32.totalorder %s292_s21, %s292_s21 }
  0x16   :  { %36 = vst.msk [vmem:[#allocation5 + $0x20] sm:$0x1] %vm33_vm0, %v27_v2  ;;  %v29_v4 = vld [vmem:[#allocation2 + $0x4f] sm:$0x1]  ;;  %v30_v5 = vld [vmem:[#allocation2 + $0x5f] sm:$0x1] }
  0x17   :  { %37 = vst.msk [vmem:[#allocation5 + $0x30] sm:$0x1] %vm33_vm0, %v28_v3  ;;  %38 = vst.msk [vmem:[#allocation5 + $0x40] sm:$0x1] %vm33_vm0, %v29_v4  ;;  %v31_v6 = vld [vmem:[#allocation2 + $0x6f] sm:$0x1] }
  0x18   :  { %39 = vst.msk [vmem:[#allocation5 + $0x50] sm:$0x1] %vm33_vm0, %v30_v5  ;;  %v32_v7 = vld [vmem:[#allocation2 + $0x7f] sm:$0x1]  ;;  %v42_v8 = vld [vmem:[#allocation2 + $0xe] sm:$0x1] }
  0x19   :  { %40 = vst.msk [vmem:[#allocation5 + $0x60] sm:$0x1] %vm33_vm0, %v31_v6  ;;  %41 = vst.msk [vmem:[#allocation5 + $0x70] sm:$0x1] %vm33_vm0, %v32_v7  ;;  %v43_v9 = vld [vmem:[#allocation2 + $0x1e] sm:$0x1] }
  0x1a   :  { %50 = vst.msk [vmem:[#allocation5 + $0x1] sm:$0x1] %vm33_vm0, %v42_v8  ;;  %v44_v10 = vld [vmem:[#allocation2 + $0x2e] sm:$0x1]  ;;  %v45_v11 = vld [vmem:[#allocation2 + $0x3e] sm:$0x1] }
  0x1b   :  { %51 = vst.msk [vmem:[#allocation5 + $0x11] sm:$0x1] %vm33_vm0, %v43_v9  ;;  %52 = vst.msk [vmem:[#allocation5 + $0x21] sm:$0x1] %vm33_vm0, %v44_v10  ;;  %v46_v12 = vld [vmem:[#allocation2 + $0x4e] sm:$0x1] }
  0x1c   :  { %53 = vst.msk [vmem:[#allocation5 + $0x31] sm:$0x1] %vm33_vm0, %v45_v11  ;;  %v47_v13 = vld [vmem:[#allocation2 + $0x5e] sm:$0x1]  ;;  %v48_v14 = vld [vmem:[#allocation2 + $0x6e] sm:$0x1] }
  0x1d   :  { %54 = vst.msk [vmem:[#allocation5 + $0x41] sm:$0x1] %vm33_vm0, %v46_v12  ;;  %55 = vst.msk [vmem:[#allocation5 + $0x51] sm:$0x1] %vm33_vm0, %v47_v13  ;;  %v49_v15 = vld [vmem:[#allocation2 + $0x7e] sm:$0x1] }
  0x1e   :  { %56 = vst.msk [vmem:[#allocation5 + $0x61] sm:$0x1] %vm33_vm0, %v48_v14  ;;  %v58_v16 = vld [vmem:[#allocation2 + $0xd] sm:$0x1]  ;;  %v59_v17 = vld [vmem:[#allocation2 + $0x1d] sm:$0x1] }
  0x1f   :  { %57 = vst.msk [vmem:[#allocation5 + $0x71] sm:$0x1] %vm33_vm0, %v49_v15  ;;  %66 = vst.msk [vmem:[#allocation5 + $0x2] sm:$0x1] %vm33_vm0, %v58_v16  ;;  %v60_v18 = vld [vmem:[#allocation2 + $0x2d] sm:$0x1] }
  0x20   :  { %67 = vst.msk [vmem:[#allocation5 + $0x12] sm:$0x1] %vm33_vm0, %v59_v17  ;;  %v61_v19 = vld [vmem:[#allocation2 + $0x3d] sm:$0x1]  ;;  %v62_v20 = vld [vmem:[#allocation2 + $0x4d] sm:$0x1] }
  0x21   :  { %68 = vst.msk [vmem:[#allocation5 + $0x22] sm:$0x1] %vm33_vm0, %v60_v18  ;;  %69 = vst.msk [vmem:[#allocation5 + $0x32] sm:$0x1] %vm33_vm0, %v61_v19  ;;  %v63_v21 = vld [vmem:[#allocation2 + $0x5d] sm:$0x1] }
  0x22   :  { %70 = vst.msk [vmem:[#allocation5 + $0x42] sm:$0x1] %vm33_vm0, %v62_v20  ;;  %v64_v22 = vld [vmem:[#allocation2 + $0x6d] sm:$0x1]  ;;  %v65_v23 = vld [vmem:[#allocation2 + $0x7d] sm:$0x1] }
  0x23   :  { %71 = vst.msk [vmem:[#allocation5 + $0x52] sm:$0x1] %vm33_vm0, %v63_v21  ;;  %72 = vst.msk [vmem:[#allocation5 + $0x62] sm:$0x1] %vm33_vm0, %v64_v22  ;;  %v74_v24 = vld [vmem:[#allocation2 + $0xc] sm:$0x1] }
  0x24   :  { %73 = vst.msk [vmem:[#allocation5 + $0x72] sm:$0x1] %vm33_vm0, %v65_v23  ;;  %v75_v25 = vld [vmem:[#allocation2 + $0x1c] sm:$0x1]  ;;  %v76_v26 = vld [vmem:[#allocation2 + $0x2c] sm:$0x1] }
  0x25   :  { %82 = vst.msk [vmem:[#allocation5 + $0x3] sm:$0x1] %vm33_vm0, %v74_v24  ;;  %83 = vst.msk [vmem:[#allocation5 + $0x13] sm:$0x1] %vm33_vm0, %v75_v25  ;;  %v77_v27 = vld [vmem:[#allocation2 + $0x3c] sm:$0x1] }
  0x26   :  { %84 = vst.msk [vmem:[#allocation5 + $0x23] sm:$0x1] %vm33_vm0, %v76_v26  ;;  %v78_v28 = vld [vmem:[#allocation2 + $0x4c] sm:$0x1]  ;;  %v79_v29 = vld [vmem:[#allocation2 + $0x5c] sm:$0x1] }
  0x27   :  { %85 = vst.msk [vmem:[#allocation5 + $0x33] sm:$0x1] %vm33_vm0, %v77_v27  ;;  %86 = vst.msk [vmem:[#allocation5 + $0x43] sm:$0x1] %vm33_vm0, %v78_v28  ;;  %v80_v30 = vld [vmem:[#allocation2 + $0x6c] sm:$0x1] }
  0x28   :  { %87 = vst.msk [vmem:[#allocation5 + $0x53] sm:$0x1] %vm33_vm0, %v79_v29  ;;  %v81_v31 = vld [vmem:[#allocation2 + $0x7c] sm:$0x1]  ;;  %v90_v32 = vld [vmem:[#allocation2 + $0xb] sm:$0x1] }
  0x29   :  { %88 = vst.msk [vmem:[#allocation5 + $0x63] sm:$0x1] %vm33_vm0, %v80_v30  ;;  %89 = vst.msk [vmem:[#allocation5 + $0x73] sm:$0x1] %vm33_vm0, %v81_v31  ;;  %v91_v33 = vld [vmem:[#allocation2 + $0x1b] sm:$0x1] }
  0x2a   :  { %98 = vst.msk [vmem:[#allocation5 + $0x4] sm:$0x1] %vm33_vm0, %v90_v32  ;;  %v92_v34 = vld [vmem:[#allocation2 + $0x2b] sm:$0x1]  ;;  %v93_v35 = vld [vmem:[#allocation2 + $0x3b] sm:$0x1] }
  0x2b   :  { %99 = vst.msk [vmem:[#allocation5 + $0x14] sm:$0x1] %vm33_vm0, %v91_v33  ;;  %100 = vst.msk [vmem:[#allocation5 + $0x24] sm:$0x1] %vm33_vm0, %v92_v34  ;;  %v94_v36 = vld [vmem:[#allocation2 + $0x4b] sm:$0x1] }
  0x2c   :  { %101 = vst.msk [vmem:[#allocation5 + $0x34] sm:$0x1] %vm33_vm0, %v93_v35  ;;  %v95_v37 = vld [vmem:[#allocation2 + $0x5b] sm:$0x1]  ;;  %v96_v38 = vld [vmem:[#allocation2 + $0x6b] sm:$0x1] }
  0x2d   :  { %102 = vst.msk [vmem:[#allocation5 + $0x44] sm:$0x1] %vm33_vm0, %v94_v36  ;;  %103 = vst.msk [vmem:[#allocation5 + $0x54] sm:$0x1] %vm33_vm0, %v95_v37  ;;  %v97_v39 = vld [vmem:[#allocation2 + $0x7b] sm:$0x1] }
  0x2e   :  { %104 = vst.msk [vmem:[#allocation5 + $0x64] sm:$0x1] %vm33_vm0, %v96_v38  ;;  %v106_v40 = vld [vmem:[#allocation2 + $0xa] sm:$0x1]  ;;  %v107_v41 = vld [vmem:[#allocation2 + $0x1a] sm:$0x1] }
  0x2f   :  { %105 = vst.msk [vmem:[#allocation5 + $0x74] sm:$0x1] %vm33_vm0, %v97_v39  ;;  %114 = vst.msk [vmem:[#allocation5 + $0x5] sm:$0x1] %vm33_vm0, %v106_v40  ;;  %v108_v42 = vld [vmem:[#allocation2 + $0x2a] sm:$0x1] }
  0x30   :  { %115 = vst.msk [vmem:[#allocation5 + $0x15] sm:$0x1] %vm33_vm0, %v107_v41  ;;  %v109_v43 = vld [vmem:[#allocation2 + $0x3a] sm:$0x1]  ;;  %v110_v44 = vld [vmem:[#allocation2 + $0x4a] sm:$0x1] }
  0x31   :  { %116 = vst.msk [vmem:[#allocation5 + $0x25] sm:$0x1] %vm33_vm0, %v108_v42  ;;  %117 = vst.msk [vmem:[#allocation5 + $0x35] sm:$0x1] %vm33_vm0, %v109_v43  ;;  %v111_v45 = vld [vmem:[#allocation2 + $0x5a] sm:$0x1] }
  0x32   :  { %118 = vst.msk [vmem:[#allocation5 + $0x45] sm:$0x1] %vm33_vm0, %v110_v44  ;;  %v112_v46 = vld [vmem:[#allocation2 + $0x6a] sm:$0x1]  ;;  %v113_v47 = vld [vmem:[#allocation2 + $0x7a] sm:$0x1] }
  0x33   :  { %119 = vst.msk [vmem:[#allocation5 + $0x55] sm:$0x1] %vm33_vm0, %v111_v45  ;;  %120 = vst.msk [vmem:[#allocation5 + $0x65] sm:$0x1] %vm33_vm0, %v112_v46  ;;  %v122_v48 = vld [vmem:[#allocation2 + $0x9] sm:$0x1] }
  0x34   :  { %121 = vst.msk [vmem:[#allocation5 + $0x75] sm:$0x1] %vm33_vm0, %v113_v47  ;;  %v123_v49 = vld [vmem:[#allocation2 + $0x19] sm:$0x1]  ;;  %v124_v50 = vld [vmem:[#allocation2 + $0x29] sm:$0x1] }
  0x35   :  { %130 = vst.msk [vmem:[#allocation5 + $0x6] sm:$0x1] %vm33_vm0, %v122_v48  ;;  %131 = vst.msk [vmem:[#allocation5 + $0x16] sm:$0x1] %vm33_vm0, %v123_v49  ;;  %v125_v51 = vld [vmem:[#allocation2 + $0x39] sm:$0x1] }
  0x36   :  { %132 = vst.msk [vmem:[#allocation5 + $0x26] sm:$0x1] %vm33_vm0, %v124_v50  ;;  %v126_v52 = vld [vmem:[#allocation2 + $0x49] sm:$0x1]  ;;  %v127_v53 = vld [vmem:[#allocation2 + $0x59] sm:$0x1] }
  0x37   :  { %133 = vst.msk [vmem:[#allocation5 + $0x36] sm:$0x1] %vm33_vm0, %v125_v51  ;;  %134 = vst.msk [vmem:[#allocation5 + $0x46] sm:$0x1] %vm33_vm0, %v126_v52  ;;  %v128_v54 = vld [vmem:[#allocation2 + $0x69] sm:$0x1] }
  0x38   :  { %135 = vst.msk [vmem:[#allocation5 + $0x56] sm:$0x1] %vm33_vm0, %v127_v53  ;;  %v129_v55 = vld [vmem:[#allocation2 + $0x79] sm:$0x1]  ;;  %v138_v56 = vld [vmem:[#allocation2 + $0x8] sm:$0x1] }
  0x39   :  { %136 = vst.msk [vmem:[#allocation5 + $0x66] sm:$0x1] %vm33_vm0, %v128_v54  ;;  %137 = vst.msk [vmem:[#allocation5 + $0x76] sm:$0x1] %vm33_vm0, %v129_v55  ;;  %v139_v57 = vld [vmem:[#allocation2 + $0x18] sm:$0x1] }
  0x3a   :  { %146 = vst.msk [vmem:[#allocation5 + $0x7] sm:$0x1] %vm33_vm0, %v138_v56  ;;  %v140_v58 = vld [vmem:[#allocation2 + $0x28] sm:$0x1]  ;;  %v141_v59 = vld [vmem:[#allocation2 + $0x38] sm:$0x1] }
  0x3b   :  { %147 = vst.msk [vmem:[#allocation5 + $0x17] sm:$0x1] %vm33_vm0, %v139_v57  ;;  %148 = vst.msk [vmem:[#allocation5 + $0x27] sm:$0x1] %vm33_vm0, %v140_v58  ;;  %v142_v60 = vld [vmem:[#allocation2 + $0x48] sm:$0x1] }
  0x3c   :  { %149 = vst.msk [vmem:[#allocation5 + $0x37] sm:$0x1] %vm33_vm0, %v141_v59  ;;  %v143_v61 = vld [vmem:[#allocation2 + $0x58] sm:$0x1]  ;;  %v144_v62 = vld [vmem:[#allocation2 + $0x68] sm:$0x1] }
  0x3d   :  { %150 = vst.msk [vmem:[#allocation5 + $0x47] sm:$0x1] %vm33_vm0, %v142_v60  ;;  %151 = vst.msk [vmem:[#allocation5 + $0x57] sm:$0x1] %vm33_vm0, %v143_v61  ;;  %v145_v63 = vld [vmem:[#allocation2 + $0x78] sm:$0x1] }
  0x3e   :  { %152 = vst.msk [vmem:[#allocation5 + $0x67] sm:$0x1] %vm33_vm0, %v144_v62  ;;  %v154_v0 = vld [vmem:[#allocation2 + $0x7] sm:$0x1]  ;;  %v155_v1 = vld [vmem:[#allocation2 + $0x17] sm:$0x1] }
  0x3f   :  { %153 = vst.msk [vmem:[#allocation5 + $0x77] sm:$0x1] %vm33_vm0, %v145_v63  ;;  %162 = vst.msk [vmem:[#allocation5 + $0x8] sm:$0x1] %vm33_vm0, %v154_v0  ;;  %v156_v2 = vld [vmem:[#allocation2 + $0x27] sm:$0x1] }
  0x40   :  { %163 = vst.msk [vmem:[#allocation5 + $0x18] sm:$0x1] %vm33_vm0, %v155_v1  ;;  %v157_v3 = vld [vmem:[#allocation2 + $0x37] sm:$0x1]  ;;  %v158_v4 = vld [vmem:[#allocation2 + $0x47] sm:$0x1] }
  0x41   :  { %164 = vst.msk [vmem:[#allocation5 + $0x28] sm:$0x1] %vm33_vm0, %v156_v2  ;;  %165 = vst.msk [vmem:[#allocation5 + $0x38] sm:$0x1] %vm33_vm0, %v157_v3  ;;  %v159_v5 = vld [vmem:[#allocation2 + $0x57] sm:$0x1] }
  0x42   :  { %166 = vst.msk [vmem:[#allocation5 + $0x48] sm:$0x1] %vm33_vm0, %v158_v4  ;;  %v160_v6 = vld [vmem:[#allocation2 + $0x67] sm:$0x1]  ;;  %v161_v7 = vld [vmem:[#allocation2 + $0x77] sm:$0x1] }
  0x43   :  { %167 = vst.msk [vmem:[#allocation5 + $0x58] sm:$0x1] %vm33_vm0, %v159_v5  ;;  %168 = vst.msk [vmem:[#allocation5 + $0x68] sm:$0x1] %vm33_vm0, %v160_v6  ;;  %v170_v8 = vld [vmem:[#allocation2 + $0x6] sm:$0x1] }
  0x44   :  { %169 = vst.msk [vmem:[#allocation5 + $0x78] sm:$0x1] %vm33_vm0, %v161_v7  ;;  %v171_v9 = vld [vmem:[#allocation2 + $0x16] sm:$0x1]  ;;  %v172_v10 = vld [vmem:[#allocation2 + $0x26] sm:$0x1] }
  0x45   :  { %178 = vst.msk [vmem:[#allocation5 + $0x9] sm:$0x1] %vm33_vm0, %v170_v8  ;;  %179 = vst.msk [vmem:[#allocation5 + $0x19] sm:$0x1] %vm33_vm0, %v171_v9  ;;  %v173_v11 = vld [vmem:[#allocation2 + $0x36] sm:$0x1] }
  0x46   :  { %180 = vst.msk [vmem:[#allocation5 + $0x29] sm:$0x1] %vm33_vm0, %v172_v10  ;;  %v174_v12 = vld [vmem:[#allocation2 + $0x46] sm:$0x1]  ;;  %v175_v13 = vld [vmem:[#allocation2 + $0x56] sm:$0x1] }
  0x47   :  { %181 = vst.msk [vmem:[#allocation5 + $0x39] sm:$0x1] %vm33_vm0, %v173_v11  ;;  %182 = vst.msk [vmem:[#allocation5 + $0x49] sm:$0x1] %vm33_vm0, %v174_v12  ;;  %v176_v14 = vld [vmem:[#allocation2 + $0x66] sm:$0x1] }
  0x48   :  { %183 = vst.msk [vmem:[#allocation5 + $0x59] sm:$0x1] %vm33_vm0, %v175_v13  ;;  %v177_v15 = vld [vmem:[#allocation2 + $0x76] sm:$0x1]  ;;  %v186_v16 = vld [vmem:[#allocation2 + $0x5] sm:$0x1] }
  0x49   :  { %184 = vst.msk [vmem:[#allocation5 + $0x69] sm:$0x1] %vm33_vm0, %v176_v14  ;;  %185 = vst.msk [vmem:[#allocation5 + $0x79] sm:$0x1] %vm33_vm0, %v177_v15  ;;  %v187_v17 = vld [vmem:[#allocation2 + $0x15] sm:$0x1] }
  0x4a   :  { %194 = vst.msk [vmem:[#allocation5 + $0xa] sm:$0x1] %vm33_vm0, %v186_v16  ;;  %v188_v18 = vld [vmem:[#allocation2 + $0x25] sm:$0x1]  ;;  %v189_v19 = vld [vmem:[#allocation2 + $0x35] sm:$0x1] }
  0x4b   :  { %195 = vst.msk [vmem:[#allocation5 + $0x1a] sm:$0x1] %vm33_vm0, %v187_v17  ;;  %196 = vst.msk [vmem:[#allocation5 + $0x2a] sm:$0x1] %vm33_vm0, %v188_v18  ;;  %v190_v20 = vld [vmem:[#allocation2 + $0x45] sm:$0x1] }
  0x4c   :  { %197 = vst.msk [vmem:[#allocation5 + $0x3a] sm:$0x1] %vm33_vm0, %v189_v19  ;;  %v191_v21 = vld [vmem:[#allocation2 + $0x55] sm:$0x1]  ;;  %v192_v22 = vld [vmem:[#allocation2 + $0x65] sm:$0x1] }
  0x4d   :  { %198 = vst.msk [vmem:[#allocation5 + $0x4a] sm:$0x1] %vm33_vm0, %v190_v20  ;;  %199 = vst.msk [vmem:[#allocation5 + $0x5a] sm:$0x1] %vm33_vm0, %v191_v21  ;;  %v193_v23 = vld [vmem:[#allocation2 + $0x75] sm:$0x1] }
  0x4e   :  { %200 = vst.msk [vmem:[#allocation5 + $0x6a] sm:$0x1] %vm33_vm0, %v192_v22  ;;  %v202_v24 = vld [vmem:[#allocation2 + $0x4] sm:$0x1]  ;;  %v203_v25 = vld [vmem:[#allocation2 + $0x14] sm:$0x1] }
  0x4f   :  { %201 = vst.msk [vmem:[#allocation5 + $0x7a] sm:$0x1] %vm33_vm0, %v193_v23  ;;  %210 = vst.msk [vmem:[#allocation5 + $0xb] sm:$0x1] %vm33_vm0, %v202_v24  ;;  %v204_v26 = vld [vmem:[#allocation2 + $0x24] sm:$0x1] }
  0x50   :  { %211 = vst.msk [vmem:[#allocation5 + $0x1b] sm:$0x1] %vm33_vm0, %v203_v25  ;;  %v205_v27 = vld [vmem:[#allocation2 + $0x34] sm:$0x1]  ;;  %v206_v28 = vld [vmem:[#allocation2 + $0x44] sm:$0x1] }
  0x51   :  { %212 = vst.msk [vmem:[#allocation5 + $0x2b] sm:$0x1] %vm33_vm0, %v204_v26  ;;  %213 = vst.msk [vmem:[#allocation5 + $0x3b] sm:$0x1] %vm33_vm0, %v205_v27  ;;  %v207_v29 = vld [vmem:[#allocation2 + $0x54] sm:$0x1] }
  0x52   :  { %214 = vst.msk [vmem:[#allocation5 + $0x4b] sm:$0x1] %vm33_vm0, %v206_v28  ;;  %v208_v30 = vld [vmem:[#allocation2 + $0x64] sm:$0x1]  ;;  %v209_v31 = vld [vmem:[#allocation2 + $0x74] sm:$0x1] }
  0x53   :  { %215 = vst.msk [vmem:[#allocation5 + $0x5b] sm:$0x1] %vm33_vm0, %v207_v29  ;;  %216 = vst.msk [vmem:[#allocation5 + $0x6b] sm:$0x1] %vm33_vm0, %v208_v30  ;;  %v218_v32 = vld [vmem:[#allocation2 + $0x3] sm:$0x1] }
  0x54   :  { %217 = vst.msk [vmem:[#allocation5 + $0x7b] sm:$0x1] %vm33_vm0, %v209_v31  ;;  %v219_v33 = vld [vmem:[#allocation2 + $0x13] sm:$0x1]  ;;  %v220_v34 = vld [vmem:[#allocation2 + $0x23] sm:$0x1] }
  0x55   :  { %226 = vst.msk [vmem:[#allocation5 + $0xc] sm:$0x1] %vm33_vm0, %v218_v32  ;;  %227 = vst.msk [vmem:[#allocation5 + $0x1c] sm:$0x1] %vm33_vm0, %v219_v33  ;;  %v221_v35 = vld [vmem:[#allocation2 + $0x33] sm:$0x1] }
  0x56   :  { %228 = vst.msk [vmem:[#allocation5 + $0x2c] sm:$0x1] %vm33_vm0, %v220_v34  ;;  %v222_v36 = vld [vmem:[#allocation2 + $0x43] sm:$0x1]  ;;  %v223_v37 = vld [vmem:[#allocation2 + $0x53] sm:$0x1] }
  0x57   :  { %229 = vst.msk [vmem:[#allocation5 + $0x3c] sm:$0x1] %vm33_vm0, %v221_v35  ;;  %230 = vst.msk [vmem:[#allocation5 + $0x4c] sm:$0x1] %vm33_vm0, %v222_v36  ;;  %v224_v38 = vld [vmem:[#allocation2 + $0x63] sm:$0x1] }
  0x58   :  { %231 = vst.msk [vmem:[#allocation5 + $0x5c] sm:$0x1] %vm33_vm0, %v223_v37  ;;  %v225_v39 = vld [vmem:[#allocation2 + $0x73] sm:$0x1]  ;;  %v234_v40 = vld [vmem:[#allocation2 + $0x2] sm:$0x1] }
  0x59   :  { %232 = vst.msk [vmem:[#allocation5 + $0x6c] sm:$0x1] %vm33_vm0, %v224_v38  ;;  %233 = vst.msk [vmem:[#allocation5 + $0x7c] sm:$0x1] %vm33_vm0, %v225_v39  ;;  %v235_v41 = vld [vmem:[#allocation2 + $0x12] sm:$0x1] }
  0x5a   :  { %242 = vst.msk [vmem:[#allocation5 + $0xd] sm:$0x1] %vm33_vm0, %v234_v40  ;;  %v236_v42 = vld [vmem:[#allocation2 + $0x22] sm:$0x1]  ;;  %v237_v43 = vld [vmem:[#allocation2 + $0x32] sm:$0x1] }
  0x5b   :  { %243 = vst.msk [vmem:[#allocation5 + $0x1d] sm:$0x1] %vm33_vm0, %v235_v41  ;;  %244 = vst.msk [vmem:[#allocation5 + $0x2d] sm:$0x1] %vm33_vm0, %v236_v42  ;;  %v238_v44 = vld [vmem:[#allocation2 + $0x42] sm:$0x1] }
  0x5c   :  { %245 = vst.msk [vmem:[#allocation5 + $0x3d] sm:$0x1] %vm33_vm0, %v237_v43  ;;  %v239_v45 = vld [vmem:[#allocation2 + $0x52] sm:$0x1]  ;;  %v240_v46 = vld [vmem:[#allocation2 + $0x62] sm:$0x1] }
  0x5d   :  { %246 = vst.msk [vmem:[#allocation5 + $0x4d] sm:$0x1] %vm33_vm0, %v238_v44  ;;  %247 = vst.msk [vmem:[#allocation5 + $0x5d] sm:$0x1] %vm33_vm0, %v239_v45  ;;  %v241_v47 = vld [vmem:[#allocation2 + $0x72] sm:$0x1] }
  0x5e   :  { %248 = vst.msk [vmem:[#allocation5 + $0x6d] sm:$0x1] %vm33_vm0, %v240_v46  ;;  %v250_v48 = vld [vmem:[#allocation2 + $0x1] sm:$0x1]  ;;  %v251_v49 = vld [vmem:[#allocation2 + $0x11] sm:$0x1] }
  0x5f   :  { %249 = vst.msk [vmem:[#allocation5 + $0x7d] sm:$0x1] %vm33_vm0, %v241_v47  ;;  %258 = vst.msk [vmem:[#allocation5 + $0xe] sm:$0x1] %vm33_vm0, %v250_v48  ;;  %v252_v50 = vld [vmem:[#allocation2 + $0x21] sm:$0x1] }
  0x60   :  { %259 = vst.msk [vmem:[#allocation5 + $0x1e] sm:$0x1] %vm33_vm0, %v251_v49  ;;  %v253_v51 = vld [vmem:[#allocation2 + $0x31] sm:$0x1]  ;;  %v254_v52 = vld [vmem:[#allocation2 + $0x41] sm:$0x1] }
  0x61   :  { %260 = vst.msk [vmem:[#allocation5 + $0x2e] sm:$0x1] %vm33_vm0, %v252_v50  ;;  %261 = vst.msk [vmem:[#allocation5 + $0x3e] sm:$0x1] %vm33_vm0, %v253_v51  ;;  %v255_v53 = vld [vmem:[#allocation2 + $0x51] sm:$0x1] }
  0x62   :  { %262 = vst.msk [vmem:[#allocation5 + $0x4e] sm:$0x1] %vm33_vm0, %v254_v52  ;;  %v256_v54 = vld [vmem:[#allocation2 + $0x61] sm:$0x1]  ;;  %v257_v55 = vld [vmem:[#allocation2 + $0x71] sm:$0x1] }
  0x63   :  { %263 = vst.msk [vmem:[#allocation5 + $0x5e] sm:$0x1] %vm33_vm0, %v255_v53  ;;  %264 = vst.msk [vmem:[#allocation5 + $0x6e] sm:$0x1] %vm33_vm0, %v256_v54  ;;  %v266_v56 = vld [vmem:[#allocation2] sm:$0x1] }
  0x64   :  { %265 = vst.msk [vmem:[#allocation5 + $0x7e] sm:$0x1] %vm33_vm0, %v257_v55  ;;  %v267_v57 = vld [vmem:[#allocation2 + $0x10] sm:$0x1]  ;;  %v268_v58 = vld [vmem:[#allocation2 + $0x20] sm:$0x1] }
  0x65   :  { %274 = vst.msk [vmem:[#allocation5 + $0xf] sm:$0x1] %vm33_vm0, %v266_v56  ;;  %275 = vst.msk [vmem:[#allocation5 + $0x1f] sm:$0x1] %vm33_vm0, %v267_v57  ;;  %v269_v59 = vld [vmem:[#allocation2 + $0x30] sm:$0x1] }
  0x66   :  { %276 = vst.msk [vmem:[#allocation5 + $0x2f] sm:$0x1] %vm33_vm0, %v268_v58  ;;  %v270_v60 = vld [vmem:[#allocation2 + $0x40] sm:$0x1]  ;;  %v271_v61 = vld [vmem:[#allocation2 + $0x50] sm:$0x1] }
  0x67   :  { %277 = vst.msk [vmem:[#allocation5 + $0x3f] sm:$0x1] %vm33_vm0, %v269_v59  ;;  %278 = vst.msk [vmem:[#allocation5 + $0x4f] sm:$0x1] %vm33_vm0, %v270_v60  ;;  %v272_v62 = vld [vmem:[#allocation2 + $0x60] sm:$0x1] }
  0x68   :  { %279 = vst.msk [vmem:[#allocation5 + $0x5f] sm:$0x1] %vm33_vm0, %v271_v61  ;;  %v273_v63 = vld [vmem:[#allocation2 + $0x70] sm:$0x1]  ;;  %280 = vst.msk [vmem:[#allocation5 + $0x6f] sm:$0x1] %vm33_vm0, %v272_v62 }
  0x69   :  { %281 = vst.msk [vmem:[#allocation5 + $0x7f] sm:$0x1] %vm33_vm0, %v273_v63  ;;  %s331_s0 = scalar_lea.vmem %s292_s21, 2048 }
  0x6a   :  { %p332_p8 = scmp.ne.s32.totalorder %s292_s21, %s331_s0  ;;  %p337_p10 = scmp.lt.s32.totalorder %s331_s0, %s331_s0 }
  0x6c   :  { %p338_p11 = por %p337_p10, %p336_p9 }
  0x6e   :  { %p339_p12 = pnand %p338_p11, %p332_p8 }
  0x70   :  { %342 = shalt.err (!%p339_p12)
}
  0x71   :  { %s343_s24 = scalar_lea.hbm %s533_s1, 2048 }
  0x72   :  { %p344_p13 = scmp.ne.s32.totalorder %s533_s1, %s343_s24  ;;  %p347_p0 = scmp.lt.u32.totalorder %s343_s24, %s533_s1 }
  0x74   :  { %p349_p1 = pnand %p347_p0, %p344_p13 }
  0x76   :  { %352 = shalt.err (!%p349_p1)
}
  0x77   :  { %297 = dma.vmem_to_hbm [thread:$0]  %s292_s21, 2048, %s533_s1, [#allocation4], %s358_s16, %s358_s16, %s359_s17  }
  0x78   :  { %355 = dma.done.wait [#allocation4], 2048  }
  0x79   :  { %356 = vsyncadd [#allocation4], 4294965248 }
  0x7a   :  { %301 = vsyncpa [#allocation3], 1 }
  0x7b   :  { %302 = vsyncpa [#allocation4], 1 }

</bundles_post_ra>
